<compile_context>
chip_gen: v7x
topology: tpu7x:2x2x1
jax: 0.10.0
libtpu: 0.0.40
codegen_flags: <defaults>
</compile_context>

<pallas_src>
import jax
import jax.numpy as jnp
from jax.experimental import pallas as pl
from jax.experimental.pallas import tpu as pltpu

_LANE = 128
_TARGET_BLOCK_BYTES = 4 * 1024 * 1024   # per-block INPUT bytes (sweet spot per measured data)
_MIN_GRID_STEPS = 4                      # >=4 steps: DMA pipelining + even 2-TC split on v7x
_MISH_X_CAP = 20.0                       # above this, tanh(softplus(x)) == 1 in f32
_RECIP_MAGIC = 0x7EF311C3                # fast-reciprocal seed constant (fits in int32)


def _round_up(a: int, b: int) -> int:
    return ((a + b - 1) // b) * b


def _mish_kernel(x_ref, o_ref):
    x = x_ref[...].astype(jnp.float32)
    # mish(x) = x * tanh(softplus(x)) = x * w / (w + 2),  with w = e^x * (e^x + 2).
    # Clamp the exponent so e^{2x} never overflows; for x > 20 the activation equals
    # x to f32 precision, handled by the final select.
    e = jnp.exp(jnp.minimum(x, _MISH_X_CAP))       # the ONLY EUP op per element
    w = e * (e + 2.0)
    d = w + 2.0                                    # d >= 2: no zero/denormal/sign issues
    # VPU-only reciprocal: exponent-negation via integer bitcast, then 3 Newton steps
    # (rel. err ~0.05 -> 2.5e-3 -> 6e-6 -> 4e-11, i.e. full f32 precision).  Keeps the
    # single EUP slot free for exp so the kernel stays HBM-bound even on v7x.
    r = pltpu.bitcast(jnp.int32(_RECIP_MAGIC) - pltpu.bitcast(d, jnp.int32), jnp.float32)
    r = r * (2.0 - d * r)
    r = r * (2.0 - d * r)
    r = r * (2.0 - d * r)
    y = x * (w * r)
    y = jnp.where(x > _MISH_X_CAP, x, y)
    o_ref[...] = y.astype(o_ref.dtype)


def mish(x: jax.Array, *, allow_input_fusion: bool = False) -> jax.Array:
    """Elementwise Mish for any float dtype/shape; matches torch x*tanh(softplus(x)).

    Set allow_input_fusion=True when calling this inside a larger jitted network so
    XLA may fuse the producing Conv/BN epilogue into the kernel's input read.
    """
    orig_shape = x.shape
    orig_dtype = x.dtype
    n = x.size
    if n == 0:
        return x
    itemsize = jnp.dtype(orig_dtype).itemsize

    # dtype-aware sublane alignment of the block: 8 rows for 32-bit, 16 for bf16/fp16.
    packing = max(1, 4 // itemsize)
    row_align = 8 * packing

    x_flat = jnp.ravel(x)
    # Only the lane dim (128) must be whole; a ragged final row-block is handled by
    # Pallas as a partial grid block, so the pad path fires only when numel % 128 != 0.
    padded_n = _round_up(n, _LANE)
    needs_pad = padded_n != n
    if needs_pad:
        x_flat = jnp.pad(x_flat, (0, padded_n - n))
    rows = padded_n // _LANE
    x2d = x_flat.reshape(rows, _LANE)              # free reshape of a contiguous array

    # Block sizing:
    #  * ~_TARGET_BLOCK_BYTES of input per block,
    #  * at least _MIN_GRID_STEPS blocks so the double-buffer has DMAs to hide,
    #  * an even number of near-equal blocks so both v7x TensorCores get balanced work.
    target_rows = max(
        row_align,
        (_TARGET_BLOCK_BYTES // (_LANE * itemsize)) // row_align * row_align,
    )
    if rows <= row_align:
        block_rows = rows                          # single tiny full-dim block (always legal)
    else:
        nblocks = max(_MIN_GRID_STEPS, 2 * pl.cdiv(rows, 2 * target_rows))
        block_rows = max(row_align, _round_up(pl.cdiv(rows, nblocks), row_align))
    grid = (pl.cdiv(rows, block_rows),)

    compiler_params = pltpu.CompilerParams(
        dimension_semantics=("parallel",),         # lets v7x shard the axis over 2 TCs
        vmem_limit_bytes=32 * 1024 * 1024,         # 4 I/O buffers x 4 MiB = 16 MiB used
        allow_input_fusion=[True] if allow_input_fusion else None,
    )

    out2d = pl.pallas_call(
        _mish_kernel,
        out_shape=jax.ShapeDtypeStruct((rows, _LANE), orig_dtype),
        grid_spec=pltpu.PrefetchScalarGridSpec(
            num_scalar_prefetch=0,
            grid=grid,
            in_specs=[pl.BlockSpec((block_rows, _LANE), lambda i: (i, 0))],
            out_specs=pl.BlockSpec((block_rows, _LANE), lambda i: (i, 0)),
        ),
        compiler_params=compiler_params,
    )(x2d)

    out_flat = out2d.reshape(-1)
    if needs_pad:
        out_flat = out_flat[:n]
    return out_flat.reshape(orig_shape)


def _mish_ref(x):
    xf = x.astype(jnp.float32)
    return (xf * jnp.tanh(jax.nn.softplus(xf))).astype(x.dtype)


def _check(x, atol, rtol):
    y = mish(x)
    jax.block_until_ready(y)
    y_ref = _mish_ref(x)
    assert y.shape == x.shape and y.dtype == x.dtype
    assert jnp.allclose(
        y.astype(jnp.float32), y_ref.astype(jnp.float32), atol=atol, rtol=rtol
    ), (x.shape, x.dtype)


if __name__ == "__main__":
    key = jax.random.PRNGKey(0)
    k1, k2, k3, k4 = jax.random.split(key, 4)

    # NCHW like a DarkNet feature map: batch=2, channels=4, spatial=16x16.
    x_small = jax.random.normal(k1, (2, 4, 16, 16), dtype=jnp.float32) * 3.0
    _check(x_small, atol=2e-5, rtol=2e-5)

    # Medium map: exercises the balanced multi-step grid (4 equal blocks).
    x_big = jax.random.normal(k2, (1, 64, 104, 104), dtype=jnp.float32) * 3.0
    _check(x_big, atol=2e-5, rtol=2e-5)

    # Odd element count -> lane padding + ragged (partial) final sublane block.
    x_odd = jax.random.normal(k3, (2, 3, 20, 20), dtype=jnp.float32) * 3.0
    _check(x_odd, atol=2e-5, rtol=2e-5)

    # bf16 path (dtype-aware sublane alignment).
    x_bf16 = (jax.random.normal(k4, (2, 64, 32, 32), dtype=jnp.float32) * 3.0).astype(
        jnp.bfloat16
    )
    _check(x_bf16, atol=2e-2, rtol=2e-2)

    print("KERNEL_OK")
</pallas_src>

<mosaic_0001>
module attributes {stable_mosaic.version = 11 : i64} {
  func.func @_mish_kernel(%arg0: i32, %arg1: memref<8x128xf32, #tpu.memory_space<vmem>>, %arg2: memref<8x128xf32, #tpu.memory_space<vmem>>) attributes {dimension_semantics = [#tpu.dimension_semantics<parallel>], iteration_bounds = array<i64: 2>, scalar_prefetch = 0 : i64, scratch_operands = 0 : i64, tpu.core_type = #tpu.core_type<tc>, window_params = [{transform_indices = @transform_0, window_bounds = array<i64: 8, 128>}, {transform_indices = @transform_1, window_bounds = array<i64: 8, 128>}]} {
    %c0 = arith.constant 0 : index
    %c0_0 = arith.constant 0 : index
    %0 = vector.load %arg1[%c0, %c0_0] : memref<8x128xf32, #tpu.memory_space<vmem>>, vector<8x128xf32>
    %cst = arith.constant 2.000000e+01 : f32
    %1 = vector.broadcast %cst : f32 to vector<8x128xf32>
    %2 = arith.minimumf %0, %1 : vector<8x128xf32>
    %3 = math.exp %2 : vector<8x128xf32>
    %cst_1 = arith.constant 2.000000e+00 : f32
    %4 = vector.broadcast %cst_1 : f32 to vector<8x128xf32>
    %5 = arith.addf %3, %4 : vector<8x128xf32>
    %6 = arith.mulf %3, %5 : vector<8x128xf32>
    %cst_2 = arith.constant 2.000000e+00 : f32
    %7 = vector.broadcast %cst_2 : f32 to vector<8x128xf32>
    %8 = arith.addf %6, %7 : vector<8x128xf32>
    %9 = tpu.bitcast %8 : vector<8x128xf32> -> vector<8x128xi32>
    %c2129859011_i32 = arith.constant 2129859011 : i32
    %10 = vector.broadcast %c2129859011_i32 : i32 to vector<8x128xi32>
    %11 = arith.subi %10, %9 : vector<8x128xi32>
    %12 = tpu.bitcast %11 : vector<8x128xi32> -> vector<8x128xf32>
    %13 = arith.mulf %8, %12 : vector<8x128xf32>
    %cst_3 = arith.constant 2.000000e+00 : f32
    %14 = vector.broadcast %cst_3 : f32 to vector<8x128xf32>
    %15 = arith.subf %14, %13 : vector<8x128xf32>
    %16 = arith.mulf %12, %15 : vector<8x128xf32>
    %17 = arith.mulf %8, %16 : vector<8x128xf32>
    %cst_4 = arith.constant 2.000000e+00 : f32
    %18 = vector.broadcast %cst_4 : f32 to vector<8x128xf32>
    %19 = arith.subf %18, %17 : vector<8x128xf32>
    %20 = arith.mulf %16, %19 : vector<8x128xf32>
    %21 = arith.mulf %8, %20 : vector<8x128xf32>
    %cst_5 = arith.constant 2.000000e+00 : f32
    %22 = vector.broadcast %cst_5 : f32 to vector<8x128xf32>
    %23 = arith.subf %22, %21 : vector<8x128xf32>
    %24 = arith.mulf %20, %23 : vector<8x128xf32>
    %25 = arith.mulf %6, %24 : vector<8x128xf32>
    %26 = arith.mulf %0, %25 : vector<8x128xf32>
    %cst_6 = arith.constant 2.000000e+01 : f32
    %27 = vector.broadcast %cst_6 : f32 to vector<8x128xf32>
    %28 = arith.cmpf ogt, %0, %27 : vector<8x128xf32>
    %29 = arith.select %28, %0, %26 : vector<8x128xi1>, vector<8x128xf32>
    %c0_7 = arith.constant 0 : index
    %c0_8 = arith.constant 0 : index
    %30 = vector.load %arg2[%c0_7, %c0_8] : memref<8x128xf32, #tpu.memory_space<vmem>>, vector<8x128xf32>
    tpu.vector_store %arg2[%c0_7, %c0_8], %29 {strides = array<i32>} : memref<8x128xf32, #tpu.memory_space<vmem>>, vector<8x128xf32>,
    return
  }
  func.func @transform_0(%arg0: i32) -> (i32, i32) {
    %c0_i32 = arith.constant 0 : i32
    %c0_i32_0 = arith.constant 0 : i32
    return %arg0, %c0_i32 : i32, i32
  }
  func.func @transform_1(%arg0: i32) -> (i32, i32) {
    %c0_i32 = arith.constant 0 : i32
    %c0_i32_0 = arith.constant 0 : i32
    return %arg0, %c0_i32 : i32, i32
  }
}

</mosaic_0001>

<bundles_post_ra>
// kernel: tpu_custom_call.1
= control target key start
LH: loop header
LB: loop body
LE: loop exit
PB: predicated region body
PF: predicated region fallthrough
CT: control target
= control target key end

     0   :  { %6 = vsyncpa [#allocation3], 0  ;;  %s571_s0 = inlined_call_operand.hbm [shape: f32[16,128], index: 0, kind: input, shape index: {}]   ;;  %s572_s1 = inlined_call_operand.hbm [shape: f32[16,128], index: 1, kind: output, shape index: {}]  }
   0x1   :  { %8 = vsyncpa [#allocation3 + $0x1], 0 }
   0x2   :  { %9 = vsyncpa [#allocation4], 0 }
   0x3   :  { %11 = vsyncpa [#allocation4 + $0x1], 0  ;;  %s410_s6 = smov 0   ;;  %s412_s7 = smov 0  }
   0x4   :  { %s414_s8 = smov 0   ;;  %s416_s9 = smov 0  }
   0x5 LB: > { %s431_s10 = sadd.s32 4294967295, %s396_s9   ;;  %s240_s11 = sadd.s32 4294967294, %s396_s9   ;;  %s396_s9 = sphi %s416_s9, %s587_s9   ;;  %s392_s8 = sphi %s414_s8, %s586_s8   ;;  %s388_s7 = sphi %s412_s7, %s585_s7   ;;  %s384_s6 = sphi %s410_s6, %s584_s6  }
   0x6   : > { %s435_s12 = sadd.s32 1, %s396_s9   ;;  %s24_s13 = sadd.s32 1, %s392_s8 }
   0x7   : > { %s21_s14 = ssub.s32 %s396_s9, %s435_s12  ;;  %p31_p0 = scmp.ne.s32.totalorder %s392_s8, %s388_s7 }
   0x8   : > { %p22_p1 = scmp.eq.s32.totalorder %s21_s14, 0  ;;  %p32_p2 = scmp.eq.s32.totalorder %s396_s9, 0 }
   0x9   : > { %p37_p3 = scmp.ne.s32.totalorder %s388_s7, %s384_s6  ;;  %p38_p4 = scmp.eq.s32.totalorder %s431_s10, 0 }
   0xa   : > { %s447_s15 = scalar_select %p22_p1, %s392_s8, %s24_s13  }
   0xb   : > { %p449_p5 = por %p32_p2, %p31_p0  ;;  %p453_p6 = por %p38_p4, %p37_p3 }
   0xc   : > { %p61_p7 = scmp.eq.s32.totalorder %s431_s10, 1  ;;  %p67_p8 = scmp.eq.s32.totalorder %s240_s11, 1 }
   0xd   : > { %p264_p10 = scmp.lt.s32.totalorder %s396_s9, 2  ;;  %s87_s20 = sand.u32 1, %s392_s8  }
   0xe   : > { %p460_p11 = por %p61_p7, %p31_p0  ;;  %p464_p12 = por %p67_p8, %p37_p3 }
   0xf   : > { %s244_s21 = sshll.u32 %s396_s9, 7  ;;  %s243_s22 = sshll.u32 %s87_s20, 3 }
  0x10   : > { %s576_s18 = scalar_select %p460_p11, 1, 0 }
  0x11   : > { %s577_s19 = scalar_select %p464_p12, 1, 0 }
  0x12   : > { %s473_s25 = scalar_lea.hbm %s571_s0, %s244_s21  ;;  %s91_s26 = scalar_lea.vmem [#allocation2], %s243_s22 }
  0x13   : > { %s98_s27 = sshll.u32 %s91_s26, 4  ;;  %p477_p13 = pnand %p264_p10, %p449_p5  ;;  %s481_s27 = int_to_ptr.vmem [resolvable:$true] %s98_s27 }
  0x14   : > { %s88_s29 = scalar_lea.sflag [#allocation3], %s87_s20  ;;  %s300_s30 = scalar_lea.hbm %s473_s25, 128 }
  0x15   : > { %p301_p2 = scmp.ne.s32.totalorder %s473_s25, %s300_s30  ;;  %p302_p3 = pneg %p477_p13 }
  0x16   : > { %s305_s4 = scalar_lea.hbm %s571_s0, 256  ;;  %p306_p5 = scmp.lt.u32.totalorder %s473_s25, %s571_s0 }
  0x17   : > { %p303_p4 = pnand %p302_p3, %p301_p2  ;;  %p307_p8 = scmp.lt.u32.totalorder %s305_s4, %s300_s30 }
  0x18   : > { %p309_p9 = scmp.lt.u32.totalorder %s300_s30, %s473_s25 }
  0x19   : > { %p304_p7 = pneg %p303_p4  ;;  %p308_p10 = por %p307_p8, %p306_p5 }
  0x1b   : > { %p310_p0 = por %p309_p9, %p308_p10 }
  0x1d   : > { %p311_p1 = pnand %p310_p0, %p304_p7 }
  0x1f   : > { %314 = shalt.err (!%p311_p1)
}
  0x20   : > { %s315_s13 = scalar_lea.vmem %s481_s27, 128  ;;  %s398_s14 = smov [#allocation2]  }
  0x21   : > { %p316_p2 = scmp.ne.s32.totalorder %s481_s27, %s315_s13  ;;  %s320_s16 = sshll.u32 %s398_s14, 4  ;;  %s321_s16 = int_to_ptr.vmem [resolvable:$false] %s320_s16 }
  0x22   : > { %s322_s20 = scalar_lea.vmem %s321_s16, 256  ;;  %p323_p11 = scmp.lt.s32.totalorder %s481_s27, %s321_s16 }
  0x23   : > { %p318_p4 = pnand %p316_p2, %p302_p3  ;;  %p324_p5 = scmp.lt.s32.totalorder %s322_s20, %s315_s13 }
  0x25   : > { %p319_p12 = pneg %p318_p4  ;;  %p325_p8 = por %p324_p5, %p323_p11 }
  0x27   : > { %p326_p9 = pnand %p325_p8, %p319_p12 }
  0x29   : > { %329 = shalt.err (!%p326_p9)
}
  0x2a   : > { %259 = dma.hbm_to_vmem [thread:$0]  (!%p477_p13), %s473_s25, 128, %s481_s27, %s88_s29  }
  0x2b   : > { %p579_p0 = scmp.lt.s32.totalorder %s396_s9, 3  ;;  %p580_p1 = scmp.ge.s32.totalorder %s396_s9, 1 }
  0x2d   : > { %p104_p3 = pnand %p580_p1, %p579_p0 }
  0x2e   : > { %s515_s21 = sand.u32 (!%p104_p3), 1, %s388_s7  }
  0x2f   : > { %107 = sbr.rel (%p104_p3) target bundleno = 116 (0x74), region = 24  ;;  %s246_s22 = sshll.u32 (!%p104_p3), %s515_s21, 3 }
  0x30   : > { %s110_s23 = scalar_lea.sflag (!%p104_p3), [#allocation3], %s515_s21  ;;  %s113_s24 = scalar_lea.vmem (!%p104_p3), [#allocation2], %s246_s22 }
  0x36   : > { %375 = dma.done.wait (%p453_p6), %s110_s23, 128  }
  0x37   : > { %377 = vsyncadd (%p453_p6), %s110_s23, 4294967168  ;;  %v132_v0 = vld [vmem:[%s113_s24] sm:$0xff]  ;;  %s131_s17 = scalar_lea.vmem [#allocation5], %s246_s22  ;;  %s249_s26 = sshll.u32 %s431_s10, 7 }
  0x38   : > { %v133_v1 = vmin.f32 %v132_v0, 20.0  ;;  %s170_s25 = sshll.u32 %s131_s17, 4  ;;  %vm153_vm0 = vcmp.gt.f32.partialorder %v132_v0, 20.0  ;;  %s529_s29 = scalar_lea.hbm %s572_s1, %s249_s26  ;;  %s524_s25 = int_to_ptr.vmem [resolvable:$true] %s170_s25 }
  0x39   : > { %s157_s30 = scalar_lea.sflag [#allocation4], %s515_s21  ;;  %s330_s2 = scalar_lea.vmem %s524_s25, 128 }
  0x3a   : > { %v134_v2 = vmul.f32 1.442695, %v133_v1  ;;  %p331_p6 = scmp.ne.s32.totalorder %s524_s25, %s330_s2  ;;  %p581_p11 = scmp.ne.s32.totalorder %s576_s18, 0 }
  0x3b   : > { %s399_s10 = smov [#allocation5]  }
  0x3c   : > { %298 = vpow2.f32 %v134_v2  ;;  %p332_p12 = pnand %p331_p6, %p581_p11  ;;  %s334_s3 = sshll.u32 %s399_s10, 4  ;;  %s335_s3 = int_to_ptr.vmem [resolvable:$false] %s334_s3 }
  0x3d   : > { %s336_s4 = scalar_lea.vmem %s335_s3, 256  ;;  %p337_p7 = scmp.lt.s32.totalorder %s524_s25, %s335_s3 }
  0x3e   : > { %p333_p13 = pneg %p332_p12  ;;  %p338_p10 = scmp.lt.s32.totalorder %s336_s4, %s330_s2 }
  0x40   : > { %p339_p2 = por %p338_p10, %p337_p7 }
  0x42   : > { %p340_p4 = pnand %p339_p2, %p333_p13 }
  0x46   : > { %v299_v3 = vpop.eup %298 }
  0x47   : > { %v136_v4 = vadd.f32 2.0, %v299_v3 }
  0x49   : > { %v137_v5 = vmul.f32 %v299_v3, %v136_v4 }
  0x4b   : > { %v138_v6 = vadd.f32 2.0, %v137_v5 }
  0x4d   : > { %v140_v7 = vsub.s32 2129859011, %v138_v6 }
  0x4f   : > { %v142_v8 = vmul.f32 %v140_v7, %v138_v6 }
  0x51   : > { %v143_v9 = vsub.f32 2.0, %v142_v8 }
  0x53   : > { %v144_v10 = vmul.f32 %v143_v9, %v140_v7 }
  0x55   : > { %v145_v11 = vmul.f32 %v144_v10, %v138_v6 }
  0x57   : > { %v146_v12 = vsub.f32 2.0, %v145_v11 }
  0x59   : > { %v147_v13 = vmul.f32 %v146_v12, %v144_v10 }
  0x5b   : > { %v148_v14 = vmul.f32 %v147_v13, %v138_v6 }
  0x5d   : > { %v149_v15 = vsub.f32 2.0, %v148_v14 }
  0x5f   : > { %v150_v16 = vmul.f32 %v149_v15, %v147_v13 }
  0x61   : > { %v151_v17 = vmul.f32 %v150_v16, %v137_v5 }
  0x63   : > { %v152_v18 = vmul.f32 %v151_v17, %v132_v0 }
  0x65   : > { %v154_v19 = vsel %vm153_vm0, %v132_v0, %v152_v18 }
  0x66   : > { %155 = vst [vmem:[%s131_s17] sm:$0xff] %v154_v19 }
  0x67   : > { %343 = shalt.err (!%p340_p4)
}
  0x68   : > { %s344_s5 = scalar_lea.hbm %s529_s29, 128  ;;  %s348_s14 = scalar_lea.hbm %s572_s1, 256 }
  0x69   : > { %p345_p5 = scmp.ne.s32.totalorder %s529_s29, %s344_s5  ;;  %p349_p0 = scmp.lt.u32.totalorder %s529_s29, %s572_s1 }
  0x6a   : > { %p350_p1 = scmp.lt.u32.totalorder %s348_s14, %s344_s5  ;;  %p352_p6 = scmp.lt.u32.totalorder %s344_s5, %s529_s29 }
  0x6b   : > { %p346_p8 = pnand %p345_p5, %p581_p11 }
  0x6c   : > { %p351_p3 = por %p350_p1, %p349_p0 }
  0x6d   : > { %p347_p9 = pneg %p346_p8 }
  0x6e   : > { %p353_p12 = por %p352_p6, %p351_p3 }
  0x70   : > { %p354_p13 = pnand %p353_p12, %p347_p9 }
  0x72   : > { %357 = shalt.err (!%p354_p13)
}
  0x73   : > { %254 = dma.vmem_to_hbm [thread:$0]  (%p581_p11), %s524_s25, 128, %s529_s29, %s157_s30  }
  0x74 PF: > { %s182_s21 = sand.u32 1, %s384_s6   ;;  %p582_p7 = scmp.ne.s32.totalorder %s577_s19, 0 }
  0x75   : > { %p583_p10 = scmp.ge.s32.totalorder %s396_s9, 2  ;;  %s183_s22 = scalar_lea.sflag [#allocation4], %s182_s21 }
  0x77   : > { %p261_p2 = pnand %p583_p10, %p582_p7 }
  0x79   : > { %379 = dma.done.wait (!%p261_p2), %s183_s22, 128  }
  0x7a   : > { %381 = vsyncadd (!%p261_p2), %s183_s22, 4294967168  ;;  %p14_p4 = scmp.ge.s32.totalorder %s435_s12, 4   ;;  %s584_s6 = smov %s388_s7 }
  0x7b   : > { %s585_s7 = smov %s392_s8  ;;  %s586_s8 = smov %s447_s15 }
  0x7c   : > { %s587_s9 = smov %s435_s12  ;;  %16 = sbr.rel (!%p14_p4) target bundleno = 5 (0x5), region = 69 }
  0x83   :  { %188 = vsyncpa [#allocation3], 1 }
  0x84   :  { %190 = vsyncpa [#allocation3 + $0x1], 1 }
  0x85   :  { %191 = vsyncpa [#allocation4], 1 }
  0x86   :  { %193 = vsyncpa [#allocation4 + $0x1], 1 }

</bundles_post_ra>
